<compile_context>
chip_gen: v5e
topology: v5e:2x2
jax: 0.10.0
libtpu: 0.0.40
codegen_flags: <defaults>
</compile_context>

<pallas_src>
import jax
import jax.numpy as jnp
from jax.experimental import pallas as pl
from jax.experimental.pallas import tpu as pltpu


def _make_identity_dma_kernel(num_chunks, chunk_rows):
    """Build a kernel that copies x -> o entirely via HBM->HBM DMA."""

    def kernel(x_hbm_ref, o_hbm_ref, sems):
        copies = []
        if num_chunks == 1:
            copies.append(pltpu.make_async_copy(x_hbm_ref, o_hbm_ref, sems.at[0]))
        else:
            for c in range(num_chunks):
                sl = pl.ds(c * chunk_rows, chunk_rows)
                copies.append(
                    pltpu.make_async_copy(
                        x_hbm_ref.at[sl], o_hbm_ref.at[sl], sems.at[c]
                    )
                )
        # Issue all DMAs first (fills multiple DMA queues), then wait for all.
        for cp in copies:
            cp.start()
        for cp in copies:
            cp.wait()

    return kernel


# Only bother splitting into multiple DMAs when each chunk moves >= 1 MiB;
# below that the extra descriptors are pure overhead.
_MIN_BYTES_PER_CHUNK = 1 << 20


def _pick_chunking(leading_dim, total_bytes):
    """Choose (num_chunks, rows_per_chunk) along the leading axis."""
    if leading_dim <= 1 or total_bytes < 2 * _MIN_BYTES_PER_CHUNK:
        return 1, leading_dim
    for n in (4, 3, 2):
        if leading_dim % n == 0 and total_bytes // n >= _MIN_BYTES_PER_CHUNK:
            return n, leading_dim // n
    return 1, leading_dim


def _identity_pallas_impl(x):
    if x.size == 0:
        return x

    orig_shape = x.shape
    # DMA wants at least one axis to slice/describe; lift 0-d to (1,).
    xr = x.reshape((1,)) if x.ndim == 0 else x

    total_bytes = xr.size * xr.dtype.itemsize
    num_chunks, chunk_rows = _pick_chunking(xr.shape[0], total_bytes)

    out = pl.pallas_call(
        _make_identity_dma_kernel(num_chunks, chunk_rows),
        out_shape=jax.ShapeDtypeStruct(xr.shape, xr.dtype),
        in_specs=[pl.BlockSpec(memory_space=pl.ANY)],
        out_specs=pl.BlockSpec(memory_space=pl.ANY),
        scratch_shapes=[pltpu.SemaphoreType.DMA((num_chunks,))],
        cost_estimate=pl.CostEstimate(
            flops=0,
            transcendentals=0,
            bytes_accessed=2 * total_bytes,
        ),
    )(xr)

    return out.reshape(orig_shape)


# jit so the (possible) reshape is a bitcast and the call fuses cleanly into
# surrounding computation.
identity_pallas = jax.jit(_identity_pallas_impl)


def identity(x: jax.Array) -> jax.Array:
    """True Identity.forward: no kernel, no HBM traffic — just return x."""
    return x


if __name__ == "__main__":
    key = jax.random.PRNGKey(0)

    # Small NCHW input consistent with a typical conv-net feature map.
    x = jax.random.normal(key, (2, 4, 16, 16), dtype=jnp.float32)

    y = identity_pallas(x)
    jax.block_until_ready(y)
    assert y.shape == x.shape, (y.shape, x.shape)
    assert y.dtype == x.dtype, (y.dtype, x.dtype)
    assert bool(jnp.array_equal(y, x)), "Identity kernel output != input"

    # Exercise the multi-chunk DMA path (4 MiB total, leading dim 4 -> 4 DMAs).
    x_big = jax.random.normal(key, (4, 16, 128, 128), dtype=jnp.float32)
    y_big = identity_pallas(x_big)
    jax.block_until_ready(y_big)
    assert bool(jnp.array_equal(y_big, x_big)), "Identity kernel output != input (big)"

    # Ragged / non-128-divisible element count — handled identically by DMA.
    x_odd = jax.random.normal(key, (3, 5, 7), dtype=jnp.float32)
    y_odd = identity_pallas(x_odd)
    jax.block_until_ready(y_odd)
    assert bool(jnp.array_equal(y_odd, x_odd)), "Identity kernel output != input (odd)"

    # Preferred production path: Identity needs no kernel at all.
    assert identity(x) is x

    print("KERNEL_OK")
</pallas_src>

<mosaic_0001>
module attributes {stable_mosaic.version = 11 : i64} {
  func.func @kernel(%arg0: memref<2x4x16x16xf32, #tpu.memory_space<any>>, %arg1: memref<2x4x16x16xf32, #tpu.memory_space<any>>, %arg2: memref<1x!tpu.dma_semaphore, #tpu.memory_space<semaphore_mem>>) attributes {dimension_semantics = [], scalar_prefetch = 0 : i64, scratch_operands = 1 : i64, tpu.core_type = #tpu.core_type<tc>} {
    %c0_i32 = arith.constant 0 : i32
    %0 = tpu.memref_slice %arg2[%c0_i32] : memref<1x!tpu.dma_semaphore, #tpu.memory_space<semaphore_mem>> -> memref<1x!tpu.dma_semaphore, #tpu.memory_space<semaphore_mem>>
    %1 = tpu.memref_squeeze %0 : memref<1x!tpu.dma_semaphore, #tpu.memory_space<semaphore_mem>> -> memref<!tpu.dma_semaphore, #tpu.memory_space<semaphore_mem>>
    tpu.enqueue_dma source(%arg0 : memref<2x4x16x16xf32, #tpu.memory_space<any>>) target(%arg1 : memref<2x4x16x16xf32, #tpu.memory_space<any>>) target_semaphore(%1 : memref<!tpu.dma_semaphore, #tpu.memory_space<semaphore_mem>>)
    %c0_i32_0 = arith.constant 0 : i32
    %2 = tpu.memref_slice %arg2[%c0_i32_0] : memref<1x!tpu.dma_semaphore, #tpu.memory_space<semaphore_mem>> -> memref<1x!tpu.dma_semaphore, #tpu.memory_space<semaphore_mem>>
    %3 = tpu.memref_squeeze %2 : memref<1x!tpu.dma_semaphore, #tpu.memory_space<semaphore_mem>> -> memref<!tpu.dma_semaphore, #tpu.memory_space<semaphore_mem>>
    tpu.wait_dma2 semaphore(%3 : memref<!tpu.dma_semaphore, #tpu.memory_space<semaphore_mem>>) src(%arg0 : memref<2x4x16x16xf32, #tpu.memory_space<any>>) dst(%arg1 : memref<2x4x16x16xf32, #tpu.memory_space<any>>)
    return
  }
}

</mosaic_0001>

<bundles_post_ra>
// kernel: _identity_pallas_impl.1
= control target key start
LH: loop header
LB: loop body
LE: loop exit
PB: predicated region body
PF: predicated region fallthrough
CT: control target
= control target key end

     0   :  { %s34_s12 = smov [#allocation2]   ;;  %s35_s13 = smov [#allocation3]   ;;  %s53_s0 = inlined_call_operand.hbm [shape: f32[2,4,16,16], index: 0, kind: input, shape index: {}]   ;;  %s54_s1 = inlined_call_operand.hbm [shape: f32[2,4,16,16], index: 1, kind: output, shape index: {}]  }
   0x1   :  { %s10_s8 = sshll.u32 %s53_s0, 4  ;;  %s12_s11 = sshll.u32 %s54_s1, 4  ;;  %s11_s8 = int_to_ptr.hbm [resolvable:$true] %s10_s8  ;;  %s13_s11 = int_to_ptr.hbm [resolvable:$true] %s12_s11 }
   0x2   :  { %s36_s14 = smov 0  }
   0x3   :  { %16 = dma.general %s11_s8, 2048, %s13_s11, %s34_s12, %s35_s13, [#allocation4], %s36_s14, 0  }
   0x4   :  { %32 = dma.done.wait [#allocation2], 2048 }
   0x5   :  { %33 = vsyncadd [#allocation2], 4294965248 }
   0x6   :  { %22 = vsyncmov [#allocation2] }
   0x9   :  { %s23_s15 = vpop.sfrf %22 }
   0xa   :  { %p28_p0 = scmp.ne.s32.totalorder %s23_s15, 0 }
   0xc   :  { %27 = shalt.err (%p28_p0)  }

</bundles_post_ra>
